<compile_context>
chip_gen: v7x
topology: tpu7x:2x2x1
jax: 0.10.0
libtpu: 0.0.40
codegen_flags: <defaults>
</compile_context>

<pallas_src>
import functools
import math

import jax
import jax.numpy as jnp
from jax.experimental import pallas as pl
from jax.experimental.pallas import tpu as pltpu


def _layernorm_kernel(alpha_ref, bias_ref, x_ref, o_ref, *, eps: float):
    # x_ref: (tile_rows, hidden) block in VMEM.
    x = x_ref[...].astype(jnp.float32)
    n = x.shape[-1]

    mean = jnp.mean(x, axis=-1, keepdims=True)
    diff = x - mean
    # torch.std uses the unbiased estimator (divide by n-1).
    var = jnp.sum(diff * diff, axis=-1, keepdims=True) * (1.0 / float(n - 1))
    std = jnp.sqrt(var)

    # Per-row scale (tile_rows, 1): folds alpha and the divide into one tiny
    # per-row vector, so the full tile only sees a mul + add.
    inv = 1.0 / (std + eps)
    scale = alpha_ref[0] * inv

    out = diff * scale + bias_ref[0]
    o_ref[...] = out.astype(o_ref.dtype)


def _pick_tile_rows(rows: int, hidden: int, dtype) -> int:
    """Largest row tile that keeps the double-buffered footprint small."""
    itemsize = jnp.dtype(dtype).itemsize
    # Sublane packing: 8 rows (f32), 16 (bf16), 32 (8-bit).
    sublane = max(8, 32 // max(1, itemsize))
    # Lane axis is padded to a multiple of 128 in VMEM layout.
    hidden_padded = ((hidden + 127) // 128) * 128 if hidden > 128 else 128
    bytes_per_row = hidden_padded * itemsize

    target_block_bytes = 2 * 1024 * 1024  # ~2 MiB per block
    t = max(sublane, (target_block_bytes // bytes_per_row) // sublane * sublane)
    t = min(t, 1024)

    # Never exceed the (sublane-rounded) row count.
    rows_padded = ((rows + sublane - 1) // sublane) * sublane
    return min(t, rows_padded)


def layer_normalization(x, alpha, bias, eps: float = 1e-6, tile_rows=None):
    """x: (..., hidden). alpha, bias: shape (1,) scalar params."""
    orig_shape = x.shape
    hidden = orig_shape[-1]
    rows = math.prod(orig_shape[:-1]) if len(orig_shape) > 1 else 1
    x2d = x.reshape(rows, hidden)

    if tile_rows is None:
        tile_rows = _pick_tile_rows(rows, hidden, x.dtype)

    grid = (pl.cdiv(rows, tile_rows),)

    kernel = functools.partial(_layernorm_kernel, eps=eps)

    out2d = pl.pallas_call(
        kernel,
        out_shape=jax.ShapeDtypeStruct((rows, hidden), x.dtype),
        grid=grid,
        in_specs=[
            pl.BlockSpec(memory_space=pltpu.SMEM),  # alpha (scalar param)
            pl.BlockSpec(memory_space=pltpu.SMEM),  # bias  (scalar param)
            pl.BlockSpec((tile_rows, hidden), lambda i: (i, 0)),
        ],
        out_specs=pl.BlockSpec((tile_rows, hidden), lambda i: (i, 0)),
        compiler_params=pltpu.CompilerParams(
            dimension_semantics=("parallel",),
            vmem_limit_bytes=32 * 1024 * 1024,  # safe on v5e/v6e/v7x
        ),
    )(alpha, bias, x2d)

    return out2d.reshape(orig_shape)


if __name__ == "__main__":
    key = jax.random.PRNGKey(0)
    batch, seq, hidden = 2, 8, 32
    x = jax.random.normal(key, (batch, seq, hidden), dtype=jnp.float32)

    # Deterministic parameter init (matches nn.Parameter(torch.ones(1)/zeros(1)))
    alpha = jnp.ones((1,), dtype=jnp.float32)
    bias = jnp.zeros((1,), dtype=jnp.float32)
    eps = 1e-6

    out = layer_normalization(x, alpha, bias, eps=eps)
    out = jax.block_until_ready(out)

    # Reference check in plain JAX (unbiased std, like torch.std)
    mean = jnp.mean(x, axis=-1, keepdims=True)
    std = jnp.std(x, axis=-1, keepdims=True, ddof=1)
    ref = alpha[0] * (x - mean) / (std + eps) + bias[0]
    assert jnp.allclose(out, ref, atol=1e-5, rtol=1e-5), "mismatch vs reference"

    print("KERNEL_OK")
</pallas_src>

<mosaic_0001>
module attributes {stable_mosaic.version = 11 : i64} {
  func.func @_layernorm_kernel(%arg0: i32, %arg1: memref<1xf32, #tpu.memory_space<smem>>, %arg2: memref<1xf32, #tpu.memory_space<smem>>, %arg3: memref<16x32xf32, #tpu.memory_space<vmem>>, %arg4: memref<16x32xf32, #tpu.memory_space<vmem>>) attributes {dimension_semantics = [#tpu.dimension_semantics<parallel>], iteration_bounds = array<i64: 1>, scalar_prefetch = 0 : i64, scratch_operands = 0 : i64, tpu.core_type = #tpu.core_type<tc>, window_params = [{transform_indices = @transform_0, window_bounds = array<i64: 1>}, {transform_indices = @transform_1, window_bounds = array<i64: 1>}, {transform_indices = @transform_2, window_bounds = array<i64: 16, 32>}, {transform_indices = @transform_3, window_bounds = array<i64: 16, 32>}]} {
    %c0 = arith.constant 0 : index
    %c0_0 = arith.constant 0 : index
    %0 = vector.load %arg3[%c0, %c0_0] : memref<16x32xf32, #tpu.memory_space<vmem>>, vector<16x32xf32>
    %cst = arith.constant dense<0.000000e+00> : vector<16xf32>
    %1 = vector.multi_reduction <add>, %0, %cst [1] : vector<16x32xf32> to vector<16xf32>
    %2 = vector.shape_cast %1 : vector<16xf32> to vector<16x1xf32>
    %cst_1 = arith.constant 3.200000e+01 : f32
    %3 = vector.broadcast %cst_1 : f32 to vector<16x1xf32>
    %4 = arith.divf %2, %3 : vector<16x1xf32>
    %5 = vector.broadcast %4 : vector<16x1xf32> to vector<16x32xf32>
    %6 = arith.subf %0, %5 : vector<16x32xf32>
    %7 = arith.mulf %6, %6 : vector<16x32xf32>
    %cst_2 = arith.constant dense<0.000000e+00> : vector<16xf32>
    %8 = vector.multi_reduction <add>, %7, %cst_2 [1] : vector<16x32xf32> to vector<16xf32>
    %9 = vector.shape_cast %8 : vector<16xf32> to vector<16x1xf32>
    %cst_3 = arith.constant 0.0322580636 : f32
    %10 = vector.broadcast %cst_3 : f32 to vector<16x1xf32>
    %11 = arith.mulf %9, %10 : vector<16x1xf32>
    %12 = math.sqrt %11 : vector<16x1xf32>
    %cst_4 = arith.constant 9.99999997E-7 : f32
    %13 = vector.broadcast %cst_4 : f32 to vector<16x1xf32>
    %14 = arith.addf %12, %13 : vector<16x1xf32>
    %cst_5 = arith.constant 1.000000e+00 : f32
    %15 = vector.broadcast %cst_5 : f32 to vector<16x1xf32>
    %16 = arith.divf %15, %14 : vector<16x1xf32>
    %c0_6 = arith.constant 0 : index
    %17 = memref.load %arg1[%c0_6] : memref<1xf32, #tpu.memory_space<smem>>
    %18 = vector.broadcast %17 : f32 to vector<16x1xf32>
    %19 = arith.mulf %18, %16 : vector<16x1xf32>
    %20 = vector.broadcast %19 : vector<16x1xf32> to vector<16x32xf32>
    %21 = arith.mulf %6, %20 : vector<16x32xf32>
    %c0_7 = arith.constant 0 : index
    %22 = memref.load %arg2[%c0_7] : memref<1xf32, #tpu.memory_space<smem>>
    %23 = vector.broadcast %22 : f32 to vector<16x32xf32>
    %24 = arith.addf %21, %23 : vector<16x32xf32>
    %c0_8 = arith.constant 0 : index
    %c0_9 = arith.constant 0 : index
    %25 = vector.load %arg4[%c0_8, %c0_9] : memref<16x32xf32, #tpu.memory_space<vmem>>, vector<16x32xf32>
    tpu.vector_store %arg4[%c0_8, %c0_9], %24 {strides = array<i32>} : memref<16x32xf32, #tpu.memory_space<vmem>>, vector<16x32xf32>,
    return
  }
  func.func @transform_0(%arg0: i32) -> i32 {
    %c0_i32 = arith.constant 0 : i32
    %c0_i32_0 = arith.constant 0 : i32
    return %c0_i32 : i32
  }
  func.func @transform_1(%arg0: i32) -> i32 {
    %c0_i32 = arith.constant 0 : i32
    %c0_i32_0 = arith.constant 0 : i32
    return %c0_i32 : i32
  }
  func.func @transform_2(%arg0: i32) -> (i32, i32) {
    %c0_i32 = arith.constant 0 : i32
    %c0_i32_0 = arith.constant 0 : i32
    return %arg0, %c0_i32 : i32, i32
  }
  func.func @transform_3(%arg0: i32) -> (i32, i32) {
    %c0_i32 = arith.constant 0 : i32
    %c0_i32_0 = arith.constant 0 : i32
    return %arg0, %c0_i32 : i32, i32
  }
}

</mosaic_0001>

<bundles_post_ra>
// kernel: tpu_custom_call.1
= control target key start
LH: loop header
LB: loop body
LE: loop exit
PB: predicated region body
PF: predicated region fallthrough
CT: control target
= control target key end

     0   :  { %10 = vsyncpa [#allocation5], 0  ;;  %s230_s0 = inlined_call_operand.<no memory space> [shape: f32[1], index: 0, kind: input, shape index: {}]   ;;  %s231_s1 = inlined_call_operand.<no memory space> [shape: f32[1], index: 1, kind: input, shape index: {}]   ;;  %s232_s2 = inlined_call_operand.hbm [shape: f32[16,32], index: 2, kind: input, shape index: {}]   ;;  %s233_s3 = inlined_call_operand.hbm [shape: f32[16,32], index: 3, kind: output, shape index: {}]  }
   0x1   :  { %11 = vsyncpa [#allocation6], 0  ;;  %s164_s12 = smov [#allocation4]   ;;  %s116_s16 = scalar_lea.hbm %s232_s2, 256 }
   0x2   :  { %s21_s13 = sshll.u32 %s164_s12, 4  ;;  %p117_p0 = scmp.ne.s32.totalorder %s232_s2, %s116_s16  ;;  %s22_s13 = int_to_ptr.vmem [resolvable:$true] %s21_s13 }
   0x3   :  { %p120_p1 = scmp.lt.u32.totalorder %s116_s16, %s232_s2 }
   0x5   :  { %p122_p2 = pnand %p120_p1, %p117_p0 }
   0x7   :  { %125 = shalt.err (!%p122_p2)
}
   0x8   :  { %s126_s21 = scalar_lea.vmem %s22_s13, 256  ;;  %p131_p4 = scmp.lt.s32.totalorder %s22_s13, %s22_s13 }
   0x9   :  { %p127_p3 = scmp.ne.s32.totalorder %s22_s13, %s126_s21  ;;  %p132_p5 = scmp.lt.s32.totalorder %s126_s21, %s126_s21 }
   0xb   :  { %p133_p6 = por %p132_p5, %p131_p4 }
   0xd   :  { %p134_p7 = pnand %p133_p6, %p127_p3 }
   0xf   :  { %137 = shalt.err (!%p134_p7)
}
  0x10   :  { %s165_s22 = smov 128   ;;  %s166_s23 = smov 8  }
  0x11   :  { %27 = dma.hbm_to_vmem [thread:$0]  %s232_s2, 256, %s22_s13, [#allocation5], %s165_s22, %s165_s22, %s166_s23  }
  0x12   :  { %160 = dma.done.wait [#allocation5], 256  }
  0x13   :  { %161 = vsyncadd [#allocation5], 4294967040  ;;  %vm33_vm0 = vcmask 261120   ;;  %v31_v0 = vld [vmem:[#allocation4] sm:$0xff]  ;;  %v32_v1 = vld [vmem:[#allocation4 + $0x8] sm:$0xff]  ;;  %v76_v30 = vstv %s230_s0  ;;  %v82_v33 = vstv %s231_s1  ;;  %s167_s29 = smov [#allocation7]  }
  0x14   :  { %v34_v2 = vsel %vm33_vm0, %v31_v0, 0.0  ;;  %v37_v3 = vsel %vm33_vm0, %v32_v1, 0.0  ;;  %s92_s30 = sshll.u32 %s167_s29, 4  ;;  %s93_s30 = int_to_ptr.vmem [resolvable:$true] %s92_s30 }
  0x15   :  { %35 = vadd.xlane.f32.xlu0 %v34_v2  ;;  %s138_s0 = scalar_lea.vmem %s93_s30, 256  ;;  %p143_p9 = scmp.lt.s32.totalorder %s93_s30, %s93_s30 }
  0x16   :  { %p139_p8 = scmp.ne.s32.totalorder %s93_s30, %s138_s0  ;;  %p144_p10 = scmp.lt.s32.totalorder %s138_s0, %s138_s0 }
  0x18   :  { %p145_p11 = por %p144_p10, %p143_p9 }
  0x19   :  { %38 = vadd.xlane.f32.xlu0 %v37_v3 }
  0x1a   :  { %p146_p12 = pnand %p145_p11, %p139_p8 }
  0xa2   :  { %v36_v4 = vpop.xlane.xlu0 %35 }
  0xa3   :  { %v41_v5 = vmul.f32 0.03125, %v36_v4 }
  0xa5   :  { %v43_v6 = vsub.f32 %v31_v0, %v41_v5 }
  0xa6   :  { %v39_v7 = vpop.xlane.xlu0 %38 }
  0xa7   :  { %v42_v8 = vmul.f32 0.03125, %v39_v7  ;;  %v45_v9 = vmul.f32 %v43_v6, %v43_v6 }
  0xa9   :  { %v44_v10 = vsub.f32 %v32_v1, %v42_v8  ;;  %v47_v11 = vsel %vm33_vm0, %v45_v9, 0.0 }
  0xaa   :  { %48 = vadd.xlane.f32.xlu1 %v47_v11 }
  0xab   :  { %v46_v12 = vmul.f32 %v44_v10, %v44_v10 }
  0xad   :  { %v50_v13 = vsel %vm33_vm0, %v46_v12, 0.0 }
  0xae   :  { %51 = vadd.xlane.f32.xlu1 %v50_v13 }
 0x137   :  { %v49_v14 = vpop.xlane.xlu1 %48 }
 0x138   :  { %v53_v15 = vmul.f32 0.032258064, %v49_v14 }
 0x13a   :  { %108 = vrsqrt.f32 %v53_v15  ;;  %vm57_vm1 = vcmp.eq.f32.partialorder %v53_v15, inf  ;;  %v60_v20 = vand.u32 2147483648, %v53_v15  ;;  %vm59_vm2 = vcmp.eq.f32.partialorder %v53_v15, 0.0 }
 0x13b   :  { %v52_v16 = vpop.xlane.xlu1 %51 }
 0x13c   :  { %v54_v17 = vmul.f32 0.032258064, %v52_v16 }
 0x13e   :  { %110 = vrsqrt.f32 %v54_v17  ;;  %vm64_vm3 = vcmp.eq.f32.partialorder %v54_v17, inf  ;;  %v67_v26 = vand.u32 2147483648, %v54_v17  ;;  %vm66_vm4 = vcmp.eq.f32.partialorder %v54_v17, 0.0 }
 0x144   :  { %v109_v18 = vpop.eup %108 }
 0x145   :  { %v56_v19 = vmul.f32 %v109_v18, %v53_v15 }
 0x147   :  { %v58_v21 = vsel %vm57_vm1, %v53_v15, %v56_v19 }
 0x148   :  { %v111_v22 = vpop.eup %110  ;;  %v61_v23 = vsel %vm59_vm2, %v60_v20, %v58_v21 }
 0x149   :  { %v69_v24 = vadd.f32 1e-06, %v61_v23  ;;  %v63_v25 = vmul.f32 %v111_v22, %v54_v17 }
 0x14b   :  { %112 = vrcp.f32 %v69_v24  ;;  %v65_v27 = vsel %vm64_vm3, %v54_v17, %v63_v25 }
 0x14c   :  { %v68_v28 = vsel %vm66_vm4, %v67_v26, %v65_v27 }
 0x14d   :  { %v70_v29 = vadd.f32 1e-06, %v68_v28 }
 0x14f   :  { %114 = vrcp.f32 %v70_v29 }
 0x155   :  { %v113_v31 = vpop.eup %112 }
 0x156   :  { %v77_v32 = vmul.f32 %v113_v31, %v76_v30 }
 0x158   :  { %v79_v34 = vmul.f32 %v77_v32, %v43_v6 }
 0x159   :  { %v115_v35 = vpop.eup %114 }
 0x15a   :  { %v78_v36 = vmul.f32 %v115_v35, %v76_v30  ;;  %v83_v37 = vadd.f32 %v82_v33, %v79_v34 }
 0x15c   :  { %v80_v38 = vmul.f32 %v78_v36, %v44_v10  ;;  %85 = vst.msk [vmem:[#allocation7] sm:$0xff] %vm33_vm0, %v83_v37 }
 0x15e   :  { %v84_v39 = vadd.f32 %v82_v33, %v80_v38 }
 0x160   :  { %86 = vst.msk [vmem:[#allocation7 + $0x8] sm:$0xff] %vm33_vm0, %v84_v39 }
 0x161   :  { %149 = shalt.err (!%p146_p12)
}
 0x162   :  { %s150_s5 = scalar_lea.hbm %s233_s3, 256 }
 0x163   :  { %p151_p13 = scmp.ne.s32.totalorder %s233_s3, %s150_s5  ;;  %p154_p0 = scmp.lt.u32.totalorder %s150_s5, %s233_s3 }
 0x165   :  { %p156_p1 = pnand %p154_p0, %p151_p13 }
 0x167   :  { %159 = shalt.err (!%p156_p1)
}
 0x168   :  { %98 = dma.vmem_to_hbm [thread:$0]  %s93_s30, 256, %s233_s3, [#allocation6], %s165_s22, %s165_s22, %s166_s23  }
 0x169   :  { %162 = dma.done.wait [#allocation6], 256  }
 0x16a   :  { %163 = vsyncadd [#allocation6], 4294967040 }
 0x16b   :  { %102 = vsyncpa [#allocation5], 1 }
 0x16c   :  { %103 = vsyncpa [#allocation6], 1 }

</bundles_post_ra>
